<compile_context>
chip_gen: v7x
topology: tpu7x:2x2x1
jax: 0.10.0
libtpu: 0.0.40
codegen_flags: <defaults>
</compile_context>

<pallas_src>
import jax
import jax.numpy as jnp
import numpy as np
from jax.experimental import pallas as pl
from jax.experimental.pallas import tpu as pltpu

_MAX_TM = 512  # sublane-row tile cap: 512 rows * 128 lanes = 65536 points / grid step


def _ba_kernel(params_ref, in_ref, out_ref):
    # ---- hoist all 30 SMEM scalars into locals once ----
    p = params_ref  # (30,) f32 in SMEM
    r1 = [p[i] for i in range(9)]            # R1 row-major
    t1x, t1y, t1z = p[9], p[10], p[11]
    r2 = [p[12 + i] for i in range(9)]       # R2 row-major
    t2x, t2y, t2z = p[21], p[22], p[23]
    fx, fy, cx, cy = p[24], p[25], p[26], p[27]
    blfx1, blfx2 = p[28], p[29]

    # ---- per-channel dense (tm, 128) slabs, read straight from the ref ----
    dx = in_ref[0]
    dy = in_ref[1]
    dz = in_ref[2]
    kp1u = in_ref[3]
    kp1v = in_ref[4]
    kp2u = in_ref[5]
    kp2v = in_ref[6]
    d1 = in_ref[7]
    d2 = in_ref[8]

    def frame(R, tx, ty, tz, blfx, kpu, kpv, d):
        ex = dx - tx
        ey = dy - ty
        ez = dz - tz
        # P = R^T (pos - t)
        Px = R[0] * ex + R[3] * ey + R[6] * ez
        Py = R[1] * ex + R[4] * ey + R[7] * ez
        Pz = R[2] * ex + R[5] * ey + R[8] * ez
        inv_x = 1.0 / Px
        du = fx * Py * inv_x + cx - kpu
        dv = fy * Pz * inv_x + cy - kpv
        dd = blfx * inv_x - d
        return du, dv, dd

    du1, dv1, dd1 = frame(r1, t1x, t1y, t1z, blfx1, kp1u, kp1v, d1)   # frame2fix
    du2, dv2, dd2 = frame(r2, t2x, t2y, t2z, blfx2, kp2u, kp2v, d2)   # frame2opt

    # ---- per-channel dense stores (no concat, no zero rows) ----
    out_ref[0] = du1
    out_ref[1] = dv1
    out_ref[2] = dd1
    out_ref[3] = du2
    out_ref[4] = dv2
    out_ref[5] = dd2


def _quat_to_rotmat(q):
    # q = [qx, qy, qz, qw] (pypose convention); normalize for SE3 semantics.
    q = q / jnp.linalg.norm(q)
    x, y, z, w = q[0], q[1], q[2], q[3]
    return jnp.array([
        [1 - 2 * (y * y + z * z), 2 * (x * y - w * z), 2 * (x * z + w * y)],
        [2 * (x * y + w * z), 1 - 2 * (x * x + z * z), 2 * (y * z - w * x)],
        [2 * (x * z - w * y), 2 * (y * z + w * x), 1 - 2 * (x * x + y * y)],
    ], dtype=jnp.float32)


def _build_params(pose2fix, pose2opt, K, blfx_1, blfx_2):
    R1 = _quat_to_rotmat(pose2fix[3:7])
    t1 = pose2fix[0:3]
    R2 = _quat_to_rotmat(pose2opt[3:7])
    t2 = pose2opt[0:3]
    intr = jnp.array([K[0, 0], K[1, 1], K[0, 2], K[1, 2]], dtype=jnp.float32)
    return jnp.concatenate([
        R1.reshape(-1), t1,                               # 0..11
        R2.reshape(-1), t2,                               # 12..23
        intr,                                             # 24..27
        jnp.array([blfx_1, blfx_2], dtype=jnp.float32),   # 28..29
    ]).astype(jnp.float32)


def _pack_inputs(pos_Tw, kp1, kp2, kp1_disp, kp2_disp):
    """Pack per-point data into a dense (9, M_pad, 128) f32 array.

    Returns (packed, tm, m_pad) where tm is the sublane-row tile for the grid.
    """
    N = pos_Tw.shape[0]
    m = -(-N // 128)                       # rows of 128 points
    if m <= _MAX_TM:
        tm = m                             # single grid step; tm == full dim (legal)
        m_pad = m
    else:
        tm = _MAX_TM                       # multiple of 8 -> always legal
        m_pad = -(-m // tm) * tm
    n_pad = m_pad * 128
    pad = n_pad - N

    rows = jnp.concatenate([
        pos_Tw.T.astype(jnp.float32),                # (3, N)
        kp1.T.astype(jnp.float32),                   # (2, N)
        kp2.T.astype(jnp.float32),                   # (2, N)
        kp1_disp.reshape(1, N).astype(jnp.float32),  # (1, N)
        kp2_disp.reshape(1, N).astype(jnp.float32),  # (1, N)
    ], axis=0)                                       # (9, N)
    if pad:
        # padding lanes: depth (row 0) = 1.0 so 1/Px stays finite in the kernel
        pad_block = jnp.zeros((9, pad), jnp.float32).at[0, :].set(1.0)
        rows = jnp.concatenate([rows, pad_block], axis=1)
    return rows.reshape(9, m_pad, 128), tm, m_pad


def pose_graph_disp_forward_packed(params, packed, tm):
    """Packed (channels-first) fast path.

    params : (30,) f32         pose/intrinsic scalars (SMEM)
    packed : (9, M_pad, 128)   per-point data, M_pad % tm == 0
    returns: (6, M_pad, 128)   ch 0-2 frame1 [du,dv,ddisp], ch 3-5 frame2
    """
    _, m_pad, _ = packed.shape
    assert m_pad % tm == 0
    grid = (m_pad // tm,)
    return pl.pallas_call(
        _ba_kernel,
        out_shape=jax.ShapeDtypeStruct((6, m_pad, 128), jnp.float32),
        grid=grid,
        in_specs=[
            pl.BlockSpec(memory_space=pltpu.MemorySpace.SMEM),
            pl.BlockSpec((9, tm, 128), lambda i: (0, i, 0)),
        ],
        out_specs=pl.BlockSpec((6, tm, 128), lambda i: (0, i, 0)),
        compiler_params=pltpu.CompilerParams(
            dimension_semantics=("parallel",),
            vmem_limit_bytes=32 * 1024 * 1024,
        ),
    )(params, packed)


def pose_graph_disp_forward(pose2fix, pose2opt, pos_Tw, K, kp1, kp2,
                            kp1_disp, kp2_disp, blfx_1, blfx_2):
    """Compatibility wrapper matching the PyTorch module: returns (2N, 3) float32."""
    N = pos_Tw.shape[0]
    params = _build_params(pose2fix, pose2opt, K, blfx_1, blfx_2)
    packed, tm, m_pad = _pack_inputs(pos_Tw, kp1, kp2, kp1_disp, kp2_disp)
    out = pose_graph_disp_forward_packed(params, packed, tm)   # (6, M_pad, 128)
    flat = out.reshape(6, m_pad * 128)[:, :N]
    frame1 = flat[0:3, :].T   # (N, 3) = [du, dv, ddisp]
    frame2 = flat[3:6, :].T   # (N, 3)
    return jnp.concatenate([frame1, frame2], axis=0)            # (2N, 3)


def _reference(pose2fix, pose2opt, pos_Tw, K, kp1, kp2,
               kp1_disp, kp2_disp, blfx_1, blfx_2):
    def act_inv(pose, pts):
        R = _quat_to_rotmat(pose[3:7])
        t = pose[0:3]
        return (pts - t[None, :]) @ R   # R^T (p - t) == (p - t) R

    def point2pixel_NED(P, K):
        u = K[0, 0] * P[:, 1] / P[:, 0] + K[0, 2]
        v = K[1, 1] * P[:, 2] / P[:, 0] + K[1, 2]
        return jnp.stack([u, v], axis=-1)

    P1 = act_inv(pose2fix, pos_Tw)
    P2 = act_inv(pose2opt, pos_Tw)
    disp1 = blfx_1 / P1[:, 0] - kp1_disp
    disp2 = blfx_2 / P2[:, 0] - kp2_disp
    rep1 = point2pixel_NED(P1, K) - kp1
    rep2 = point2pixel_NED(P2, K) - kp2
    return jnp.concatenate(
        [jnp.concatenate([rep1, rep2], axis=0),
         jnp.concatenate([disp1, disp2], axis=0)[:, None]], axis=1)


if __name__ == "__main__":
    key = jax.random.PRNGKey(0)
    N = 200  # small, non-multiple-of-128 -> also exercises the padding path

    k = iter(jax.random.split(key, 12))
    # world points: positive depth-ish x, lateral y/z
    x = jax.random.uniform(next(k), (N, 1), minval=2.0, maxval=10.0)
    yz = jax.random.uniform(next(k), (N, 2), minval=-3.0, maxval=3.0)
    pos_Tw = jnp.concatenate([x, yz], axis=1).astype(jnp.float32)

    def rand_pose(kk):
        kk1, kk2 = jax.random.split(kk)
        t = jax.random.uniform(kk1, (3,), minval=-0.5, maxval=0.5)
        q = jax.random.normal(kk2, (4,)) * jnp.array([0.05, 0.05, 0.05, 1.0]) \
            + jnp.array([0.0, 0.0, 0.0, 1.0])
        q = q / jnp.linalg.norm(q)
        return jnp.concatenate([t, q]).astype(jnp.float32)  # [t, qx, qy, qz, qw]

    pose2fix = rand_pose(next(k))
    pose2opt = rand_pose(next(k))

    K = jnp.array([[320.0, 0.0, 160.0],
                   [0.0, 320.0, 120.0],
                   [0.0, 0.0, 1.0]], dtype=jnp.float32)

    kp1 = jax.random.uniform(next(k), (N, 2), minval=0.0, maxval=320.0).astype(jnp.float32)
    kp2 = jax.random.uniform(next(k), (N, 2), minval=0.0, maxval=320.0).astype(jnp.float32)
    kp1_disp = jax.random.uniform(next(k), (N,), minval=1.0, maxval=30.0).astype(jnp.float32)
    kp2_disp = jax.random.uniform(next(k), (N,), minval=1.0, maxval=30.0).astype(jnp.float32)

    baseline_1, baseline_2 = 0.1, 0.1
    blfx_1 = jnp.float32(baseline_1 * 320.0)  # baseline * K[0,0,0] of frame2fix
    blfx_2 = jnp.float32(baseline_2 * 320.0)  # baseline * K[0,0,0] of frame2opt

    out = pose_graph_disp_forward(pose2fix, pose2opt, pos_Tw, K, kp1, kp2,
                                  kp1_disp, kp2_disp, blfx_1, blfx_2)
    out = jax.block_until_ready(out)

    ref = _reference(pose2fix, pose2opt, pos_Tw, K, kp1, kp2,
                     kp1_disp, kp2_disp, blfx_1, blfx_2)
    np.testing.assert_allclose(np.asarray(out), np.asarray(ref), rtol=1e-4, atol=1e-3)
    assert out.shape == (2 * N, 3)
    print("KERNEL_OK")
</pallas_src>

<mosaic_0001>
module attributes {stable_mosaic.version = 11 : i64} {
  func.func @_ba_kernel(%arg0: i32, %arg1: memref<30xf32, #tpu.memory_space<smem>>, %arg2: memref<9x2x128xf32, #tpu.memory_space<vmem>>, %arg3: memref<6x2x128xf32, #tpu.memory_space<vmem>>) attributes {dimension_semantics = [#tpu.dimension_semantics<parallel>], iteration_bounds = array<i64: 1>, scalar_prefetch = 0 : i64, scratch_operands = 0 : i64, tpu.core_type = #tpu.core_type<tc>, window_params = [{transform_indices = @transform_0, window_bounds = array<i64: 30>}, {transform_indices = @transform_1, window_bounds = array<i64: 9, 2, 128>}, {transform_indices = @transform_2, window_bounds = array<i64: 6, 2, 128>}]} {
    %c0 = arith.constant 0 : index
    %0 = memref.load %arg1[%c0] : memref<30xf32, #tpu.memory_space<smem>>
    %c1 = arith.constant 1 : index
    %1 = memref.load %arg1[%c1] : memref<30xf32, #tpu.memory_space<smem>>
    %c2 = arith.constant 2 : index
    %2 = memref.load %arg1[%c2] : memref<30xf32, #tpu.memory_space<smem>>
    %c3 = arith.constant 3 : index
    %3 = memref.load %arg1[%c3] : memref<30xf32, #tpu.memory_space<smem>>
    %c4 = arith.constant 4 : index
    %4 = memref.load %arg1[%c4] : memref<30xf32, #tpu.memory_space<smem>>
    %c5 = arith.constant 5 : index
    %5 = memref.load %arg1[%c5] : memref<30xf32, #tpu.memory_space<smem>>
    %c6 = arith.constant 6 : index
    %6 = memref.load %arg1[%c6] : memref<30xf32, #tpu.memory_space<smem>>
    %c7 = arith.constant 7 : index
    %7 = memref.load %arg1[%c7] : memref<30xf32, #tpu.memory_space<smem>>
    %c8 = arith.constant 8 : index
    %8 = memref.load %arg1[%c8] : memref<30xf32, #tpu.memory_space<smem>>
    %c9 = arith.constant 9 : index
    %9 = memref.load %arg1[%c9] : memref<30xf32, #tpu.memory_space<smem>>
    %c10 = arith.constant 10 : index
    %10 = memref.load %arg1[%c10] : memref<30xf32, #tpu.memory_space<smem>>
    %c11 = arith.constant 11 : index
    %11 = memref.load %arg1[%c11] : memref<30xf32, #tpu.memory_space<smem>>
    %c12 = arith.constant 12 : index
    %12 = memref.load %arg1[%c12] : memref<30xf32, #tpu.memory_space<smem>>
    %c13 = arith.constant 13 : index
    %13 = memref.load %arg1[%c13] : memref<30xf32, #tpu.memory_space<smem>>
    %c14 = arith.constant 14 : index
    %14 = memref.load %arg1[%c14] : memref<30xf32, #tpu.memory_space<smem>>
    %c15 = arith.constant 15 : index
    %15 = memref.load %arg1[%c15] : memref<30xf32, #tpu.memory_space<smem>>
    %c16 = arith.constant 16 : index
    %16 = memref.load %arg1[%c16] : memref<30xf32, #tpu.memory_space<smem>>
    %c17 = arith.constant 17 : index
    %17 = memref.load %arg1[%c17] : memref<30xf32, #tpu.memory_space<smem>>
    %c18 = arith.constant 18 : index
    %18 = memref.load %arg1[%c18] : memref<30xf32, #tpu.memory_space<smem>>
    %c19 = arith.constant 19 : index
    %19 = memref.load %arg1[%c19] : memref<30xf32, #tpu.memory_space<smem>>
    %c20 = arith.constant 20 : index
    %20 = memref.load %arg1[%c20] : memref<30xf32, #tpu.memory_space<smem>>
    %c21 = arith.constant 21 : index
    %21 = memref.load %arg1[%c21] : memref<30xf32, #tpu.memory_space<smem>>
    %c22 = arith.constant 22 : index
    %22 = memref.load %arg1[%c22] : memref<30xf32, #tpu.memory_space<smem>>
    %c23 = arith.constant 23 : index
    %23 = memref.load %arg1[%c23] : memref<30xf32, #tpu.memory_space<smem>>
    %c24 = arith.constant 24 : index
    %24 = memref.load %arg1[%c24] : memref<30xf32, #tpu.memory_space<smem>>
    %c25 = arith.constant 25 : index
    %25 = memref.load %arg1[%c25] : memref<30xf32, #tpu.memory_space<smem>>
    %c26 = arith.constant 26 : index
    %26 = memref.load %arg1[%c26] : memref<30xf32, #tpu.memory_space<smem>>
    %c27 = arith.constant 27 : index
    %27 = memref.load %arg1[%c27] : memref<30xf32, #tpu.memory_space<smem>>
    %c28 = arith.constant 28 : index
    %28 = memref.load %arg1[%c28] : memref<30xf32, #tpu.memory_space<smem>>
    %c29 = arith.constant 29 : index
    %29 = memref.load %arg1[%c29] : memref<30xf32, #tpu.memory_space<smem>>
    %c0_0 = arith.constant 0 : index
    %c0_1 = arith.constant 0 : index
    %c0_2 = arith.constant 0 : index
    %30 = vector.load %arg2[%c0_0, %c0_1, %c0_2] : memref<9x2x128xf32, #tpu.memory_space<vmem>>, vector<1x2x128xf32>
    %31 = vector.shape_cast %30 : vector<1x2x128xf32> to vector<2x128xf32>
    %c1_3 = arith.constant 1 : index
    %c0_4 = arith.constant 0 : index
    %c0_5 = arith.constant 0 : index
    %32 = vector.load %arg2[%c1_3, %c0_4, %c0_5] : memref<9x2x128xf32, #tpu.memory_space<vmem>>, vector<1x2x128xf32>
    %33 = vector.shape_cast %32 : vector<1x2x128xf32> to vector<2x128xf32>
    %c2_6 = arith.constant 2 : index
    %c0_7 = arith.constant 0 : index
    %c0_8 = arith.constant 0 : index
    %34 = vector.load %arg2[%c2_6, %c0_7, %c0_8] : memref<9x2x128xf32, #tpu.memory_space<vmem>>, vector<1x2x128xf32>
    %35 = vector.shape_cast %34 : vector<1x2x128xf32> to vector<2x128xf32>
    %c3_9 = arith.constant 3 : index
    %c0_10 = arith.constant 0 : index
    %c0_11 = arith.constant 0 : index
    %36 = vector.load %arg2[%c3_9, %c0_10, %c0_11] : memref<9x2x128xf32, #tpu.memory_space<vmem>>, vector<1x2x128xf32>
    %37 = vector.shape_cast %36 : vector<1x2x128xf32> to vector<2x128xf32>
    %c4_12 = arith.constant 4 : index
    %c0_13 = arith.constant 0 : index
    %c0_14 = arith.constant 0 : index
    %38 = vector.load %arg2[%c4_12, %c0_13, %c0_14] : memref<9x2x128xf32, #tpu.memory_space<vmem>>, vector<1x2x128xf32>
    %39 = vector.shape_cast %38 : vector<1x2x128xf32> to vector<2x128xf32>
    %c5_15 = arith.constant 5 : index
    %c0_16 = arith.constant 0 : index
    %c0_17 = arith.constant 0 : index
    %40 = vector.load %arg2[%c5_15, %c0_16, %c0_17] : memref<9x2x128xf32, #tpu.memory_space<vmem>>, vector<1x2x128xf32>
    %41 = vector.shape_cast %40 : vector<1x2x128xf32> to vector<2x128xf32>
    %c6_18 = arith.constant 6 : index
    %c0_19 = arith.constant 0 : index
    %c0_20 = arith.constant 0 : index
    %42 = vector.load %arg2[%c6_18, %c0_19, %c0_20] : memref<9x2x128xf32, #tpu.memory_space<vmem>>, vector<1x2x128xf32>
    %43 = vector.shape_cast %42 : vector<1x2x128xf32> to vector<2x128xf32>
    %c7_21 = arith.constant 7 : index
    %c0_22 = arith.constant 0 : index
    %c0_23 = arith.constant 0 : index
    %44 = vector.load %arg2[%c7_21, %c0_22, %c0_23] : memref<9x2x128xf32, #tpu.memory_space<vmem>>, vector<1x2x128xf32>
    %45 = vector.shape_cast %44 : vector<1x2x128xf32> to vector<2x128xf32>
    %c8_24 = arith.constant 8 : index
    %c0_25 = arith.constant 0 : index
    %c0_26 = arith.constant 0 : index
    %46 = vector.load %arg2[%c8_24, %c0_25, %c0_26] : memref<9x2x128xf32, #tpu.memory_space<vmem>>, vector<1x2x128xf32>
    %47 = vector.shape_cast %46 : vector<1x2x128xf32> to vector<2x128xf32>
    %48 = vector.broadcast %9 : f32 to vector<2x128xf32>
    %49 = arith.subf %31, %48 : vector<2x128xf32>
    %50 = vector.broadcast %10 : f32 to vector<2x128xf32>
    %51 = arith.subf %33, %50 : vector<2x128xf32>
    %52 = vector.broadcast %11 : f32 to vector<2x128xf32>
    %53 = arith.subf %35, %52 : vector<2x128xf32>
    %54 = vector.broadcast %0 : f32 to vector<2x128xf32>
    %55 = arith.mulf %54, %49 : vector<2x128xf32>
    %56 = vector.broadcast %3 : f32 to vector<2x128xf32>
    %57 = arith.mulf %56, %51 : vector<2x128xf32>
    %58 = arith.addf %55, %57 : vector<2x128xf32>
    %59 = vector.broadcast %6 : f32 to vector<2x128xf32>
    %60 = arith.mulf %59, %53 : vector<2x128xf32>
    %61 = arith.addf %58, %60 : vector<2x128xf32>
    %62 = vector.broadcast %1 : f32 to vector<2x128xf32>
    %63 = arith.mulf %62, %49 : vector<2x128xf32>
    %64 = vector.broadcast %4 : f32 to vector<2x128xf32>
    %65 = arith.mulf %64, %51 : vector<2x128xf32>
    %66 = arith.addf %63, %65 : vector<2x128xf32>
    %67 = vector.broadcast %7 : f32 to vector<2x128xf32>
    %68 = arith.mulf %67, %53 : vector<2x128xf32>
    %69 = arith.addf %66, %68 : vector<2x128xf32>
    %70 = vector.broadcast %2 : f32 to vector<2x128xf32>
    %71 = arith.mulf %70, %49 : vector<2x128xf32>
    %72 = vector.broadcast %5 : f32 to vector<2x128xf32>
    %73 = arith.mulf %72, %51 : vector<2x128xf32>
    %74 = arith.addf %71, %73 : vector<2x128xf32>
    %75 = vector.broadcast %8 : f32 to vector<2x128xf32>
    %76 = arith.mulf %75, %53 : vector<2x128xf32>
    %77 = arith.addf %74, %76 : vector<2x128xf32>
    %cst = arith.constant 1.000000e+00 : f32
    %78 = vector.broadcast %cst : f32 to vector<2x128xf32>
    %79 = arith.divf %78, %61 : vector<2x128xf32>
    %80 = vector.broadcast %24 : f32 to vector<2x128xf32>
    %81 = arith.mulf %80, %69 : vector<2x128xf32>
    %82 = arith.mulf %81, %79 : vector<2x128xf32>
    %83 = vector.broadcast %26 : f32 to vector<2x128xf32>
    %84 = arith.addf %82, %83 : vector<2x128xf32>
    %85 = arith.subf %84, %37 : vector<2x128xf32>
    %86 = vector.broadcast %25 : f32 to vector<2x128xf32>
    %87 = arith.mulf %86, %77 : vector<2x128xf32>
    %88 = arith.mulf %87, %79 : vector<2x128xf32>
    %89 = vector.broadcast %27 : f32 to vector<2x128xf32>
    %90 = arith.addf %88, %89 : vector<2x128xf32>
    %91 = arith.subf %90, %39 : vector<2x128xf32>
    %92 = vector.broadcast %28 : f32 to vector<2x128xf32>
    %93 = arith.mulf %92, %79 : vector<2x128xf32>
    %94 = arith.subf %93, %45 : vector<2x128xf32>
    %95 = vector.broadcast %21 : f32 to vector<2x128xf32>
    %96 = arith.subf %31, %95 : vector<2x128xf32>
    %97 = vector.broadcast %22 : f32 to vector<2x128xf32>
    %98 = arith.subf %33, %97 : vector<2x128xf32>
    %99 = vector.broadcast %23 : f32 to vector<2x128xf32>
    %100 = arith.subf %35, %99 : vector<2x128xf32>
    %101 = vector.broadcast %12 : f32 to vector<2x128xf32>
    %102 = arith.mulf %101, %96 : vector<2x128xf32>
    %103 = vector.broadcast %15 : f32 to vector<2x128xf32>
    %104 = arith.mulf %103, %98 : vector<2x128xf32>
    %105 = arith.addf %102, %104 : vector<2x128xf32>
    %106 = vector.broadcast %18 : f32 to vector<2x128xf32>
    %107 = arith.mulf %106, %100 : vector<2x128xf32>
    %108 = arith.addf %105, %107 : vector<2x128xf32>
    %109 = vector.broadcast %13 : f32 to vector<2x128xf32>
    %110 = arith.mulf %109, %96 : vector<2x128xf32>
    %111 = vector.broadcast %16 : f32 to vector<2x128xf32>
    %112 = arith.mulf %111, %98 : vector<2x128xf32>
    %113 = arith.addf %110, %112 : vector<2x128xf32>
    %114 = vector.broadcast %19 : f32 to vector<2x128xf32>
    %115 = arith.mulf %114, %100 : vector<2x128xf32>
    %116 = arith.addf %113, %115 : vector<2x128xf32>
    %117 = vector.broadcast %14 : f32 to vector<2x128xf32>
    %118 = arith.mulf %117, %96 : vector<2x128xf32>
    %119 = vector.broadcast %17 : f32 to vector<2x128xf32>
    %120 = arith.mulf %119, %98 : vector<2x128xf32>
    %121 = arith.addf %118, %120 : vector<2x128xf32>
    %122 = vector.broadcast %20 : f32 to vector<2x128xf32>
    %123 = arith.mulf %122, %100 : vector<2x128xf32>
    %124 = arith.addf %121, %123 : vector<2x128xf32>
    %cst_27 = arith.constant 1.000000e+00 : f32
    %125 = vector.broadcast %cst_27 : f32 to vector<2x128xf32>
    %126 = arith.divf %125, %108 : vector<2x128xf32>
    %127 = vector.broadcast %24 : f32 to vector<2x128xf32>
    %128 = arith.mulf %127, %116 : vector<2x128xf32>
    %129 = arith.mulf %128, %126 : vector<2x128xf32>
    %130 = vector.broadcast %26 : f32 to vector<2x128xf32>
    %131 = arith.addf %129, %130 : vector<2x128xf32>
    %132 = arith.subf %131, %41 : vector<2x128xf32>
    %133 = vector.broadcast %25 : f32 to vector<2x128xf32>
    %134 = arith.mulf %133, %124 : vector<2x128xf32>
    %135 = arith.mulf %134, %126 : vector<2x128xf32>
    %136 = vector.broadcast %27 : f32 to vector<2x128xf32>
    %137 = arith.addf %135, %136 : vector<2x128xf32>
    %138 = arith.subf %137, %43 : vector<2x128xf32>
    %139 = vector.broadcast %29 : f32 to vector<2x128xf32>
    %140 = arith.mulf %139, %126 : vector<2x128xf32>
    %141 = arith.subf %140, %47 : vector<2x128xf32>
    %c0_28 = arith.constant 0 : index
    %c0_29 = arith.constant 0 : index
    %c0_30 = arith.constant 0 : index
    %142 = vector.load %arg3[%c0_28, %c0_29, %c0_30] : memref<6x2x128xf32, #tpu.memory_space<vmem>>, vector<1x2x128xf32>
    %143 = vector.shape_cast %142 : vector<1x2x128xf32> to vector<2x128xf32>
    %144 = vector.shape_cast %85 : vector<2x128xf32> to vector<1x2x128xf32>
    tpu.vector_store %arg3[%c0_28, %c0_29, %c0_30], %144 {strides = array<i32>} : memref<6x2x128xf32, #tpu.memory_space<vmem>>, vector<1x2x128xf32>,
    %c1_31 = arith.constant 1 : index
    %c0_32 = arith.constant 0 : index
    %c0_33 = arith.constant 0 : index
    %145 = vector.load %arg3[%c1_31, %c0_32, %c0_33] : memref<6x2x128xf32, #tpu.memory_space<vmem>>, vector<1x2x128xf32>
    %146 = vector.shape_cast %145 : vector<1x2x128xf32> to vector<2x128xf32>
    %147 = vector.shape_cast %91 : vector<2x128xf32> to vector<1x2x128xf32>
    tpu.vector_store %arg3[%c1_31, %c0_32, %c0_33], %147 {strides = array<i32>} : memref<6x2x128xf32, #tpu.memory_space<vmem>>, vector<1x2x128xf32>,
    %c2_34 = arith.constant 2 : index
    %c0_35 = arith.constant 0 : index
    %c0_36 = arith.constant 0 : index
    %148 = vector.load %arg3[%c2_34, %c0_35, %c0_36] : memref<6x2x128xf32, #tpu.memory_space<vmem>>, vector<1x2x128xf32>
    %149 = vector.shape_cast %148 : vector<1x2x128xf32> to vector<2x128xf32>
    %150 = vector.shape_cast %94 : vector<2x128xf32> to vector<1x2x128xf32>
    tpu.vector_store %arg3[%c2_34, %c0_35, %c0_36], %150 {strides = array<i32>} : memref<6x2x128xf32, #tpu.memory_space<vmem>>, vector<1x2x128xf32>,
    %c3_37 = arith.constant 3 : index
    %c0_38 = arith.constant 0 : index
    %c0_39 = arith.constant 0 : index
    %151 = vector.load %arg3[%c3_37, %c0_38, %c0_39] : memref<6x2x128xf32, #tpu.memory_space<vmem>>, vector<1x2x128xf32>
    %152 = vector.shape_cast %151 : vector<1x2x128xf32> to vector<2x128xf32>
    %153 = vector.shape_cast %132 : vector<2x128xf32> to vector<1x2x128xf32>
    tpu.vector_store %arg3[%c3_37, %c0_38, %c0_39], %153 {strides = array<i32>} : memref<6x2x128xf32, #tpu.memory_space<vmem>>, vector<1x2x128xf32>,
    %c4_40 = arith.constant 4 : index
    %c0_41 = arith.constant 0 : index
    %c0_42 = arith.constant 0 : index
    %154 = vector.load %arg3[%c4_40, %c0_41, %c0_42] : memref<6x2x128xf32, #tpu.memory_space<vmem>>, vector<1x2x128xf32>
    %155 = vector.shape_cast %154 : vector<1x2x128xf32> to vector<2x128xf32>
    %156 = vector.shape_cast %138 : vector<2x128xf32> to vector<1x2x128xf32>
    tpu.vector_store %arg3[%c4_40, %c0_41, %c0_42], %156 {strides = array<i32>} : memref<6x2x128xf32, #tpu.memory_space<vmem>>, vector<1x2x128xf32>,
    %c5_43 = arith.constant 5 : index
    %c0_44 = arith.constant 0 : index
    %c0_45 = arith.constant 0 : index
    %157 = vector.load %arg3[%c5_43, %c0_44, %c0_45] : memref<6x2x128xf32, #tpu.memory_space<vmem>>, vector<1x2x128xf32>
    %158 = vector.shape_cast %157 : vector<1x2x128xf32> to vector<2x128xf32>
    %159 = vector.shape_cast %141 : vector<2x128xf32> to vector<1x2x128xf32>
    tpu.vector_store %arg3[%c5_43, %c0_44, %c0_45], %159 {strides = array<i32>} : memref<6x2x128xf32, #tpu.memory_space<vmem>>, vector<1x2x128xf32>,
    return
  }
  func.func @transform_0(%arg0: i32) -> i32 {
    %c0_i32 = arith.constant 0 : i32
    %c0_i32_0 = arith.constant 0 : i32
    return %c0_i32 : i32
  }
  func.func @transform_1(%arg0: i32) -> (i32, i32, i32) {
    %c0_i32 = arith.constant 0 : i32
    %c0_i32_0 = arith.constant 0 : i32
    %c0_i32_1 = arith.constant 0 : i32
    return %c0_i32, %arg0, %c0_i32_0 : i32, i32, i32
  }
  func.func @transform_2(%arg0: i32) -> (i32, i32, i32) {
    %c0_i32 = arith.constant 0 : i32
    %c0_i32_0 = arith.constant 0 : i32
    %c0_i32_1 = arith.constant 0 : i32
    return %c0_i32, %arg0, %c0_i32_0 : i32, i32, i32
  }
}

</mosaic_0001>

<bundles_post_ra>
// kernel: tpu_custom_call.1
= control target key start
LH: loop header
LB: loop body
LE: loop exit
PB: predicated region body
PF: predicated region fallthrough
CT: control target
= control target key end

     0   :  { %7 = vsyncpa [#allocation5], 0  ;;  %s442_s0 = inlined_call_operand.hbm [shape: f32[30], index: 0, kind: input, shape index: {}]   ;;  %s443_s1 = inlined_call_operand.hbm [shape: f32[9,2,128], index: 1, kind: input, shape index: {}]   ;;  %s444_s2 = inlined_call_operand.hbm [shape: f32[6,2,128], index: 2, kind: output, shape index: {}]  }
   0x1   :  { %8 = vsyncpa [#allocation3], 0 }
   0x2   :  { %9 = vsyncpa [#allocation4], 0  ;;  %s241_s11 = scalar_lea.hbm %s442_s0, 16 }
   0x3   :  { %p242_p0 = scmp.ne.s32.totalorder %s442_s0, %s241_s11  ;;  %p245_p1 = scmp.lt.u32.totalorder %s241_s11, %s442_s0 }
   0x5   :  { %p247_p2 = pnand %p245_p1, %p242_p0 }
   0x7   :  { %250 = shalt.err (!%p247_p2)
}
   0x8   :  { %s301_s16 = smov [#allocation2]   ;;  %s302_s19 = smov [#allocation6]  }
   0x9   :  { %17 = dma.hbm_to_smem %s442_s0, 16, %s301_s16, [#allocation5]  }
   0xa   :  { %s23_s20 = sshll.u32 %s302_s19, 4  ;;  %s251_s23 = scalar_lea.hbm %s443_s1, 288  ;;  %s24_s20 = int_to_ptr.vmem [resolvable:$true] %s23_s20 }
   0xb   :  { %p252_p3 = scmp.ne.s32.totalorder %s443_s1, %s251_s23  ;;  %p255_p4 = scmp.lt.u32.totalorder %s251_s23, %s443_s1 }
   0xd   :  { %p257_p5 = pnand %p255_p4, %p252_p3 }
   0xf   :  { %260 = shalt.err (!%p257_p5)
}
  0x10   :  { %s261_s28 = scalar_lea.vmem %s24_s20, 288  ;;  %p266_p7 = scmp.lt.s32.totalorder %s24_s20, %s24_s20 }
  0x11   :  { %p262_p6 = scmp.ne.s32.totalorder %s24_s20, %s261_s28  ;;  %p267_p8 = scmp.lt.s32.totalorder %s261_s28, %s261_s28 }
  0x13   :  { %p268_p9 = por %p267_p8, %p266_p7 }
  0x15   :  { %p269_p10 = pnand %p268_p9, %p262_p6 }
  0x17   :  { %272 = shalt.err (!%p269_p10)
}
  0x18   :  { %s303_s0 = smov 32   ;;  %s304_s29 = smov 2  }
  0x19   :  { %29 = dma.hbm_to_vmem [thread:$0]  %s443_s1, 288, %s24_s20, [#allocation3], %s303_s0, %s303_s0, %s304_s29  }
  0x1a   :  { %295 = dma.done.wait [#allocation5], 16  }
  0x1b   :  { %296 = vsyncadd [#allocation5], 4294967280 }
  0x1c   :  { %297 = dma.done.wait [#allocation3], 288  }
  0x1d   :  { %298 = vsyncadd [#allocation3], 4294967008 }
  0x1e   :  { %36 = sfence }
  0x1f   :  { %s348_s4 = sld [smem:[#allocation2]]  ;;  %s350_s5 = sld [smem:[#allocation2 + $0x1]]  ;;  %v67_v0 = vld [vmem:[#allocation6] sm:$0x3]  ;;  %v69_v1 = vld [vmem:[#allocation6 + $0x2] sm:$0x3] }
  0x20   :  { %s352_s6 = sld [smem:[#allocation2 + $0x3]]  ;;  %s354_s7 = sld [smem:[#allocation2 + $0x4]]  ;;  %v71_v2 = vld [vmem:[#allocation6 + $0x4] sm:$0x3] }
  0x21   :  { %s356_s8 = sld [smem:[#allocation2 + $0x6]]  ;;  %s211_s9 = sld [smem:[#allocation2 + $0x9]] }
  0x22   :  { %s212_s1 = sld [smem:[#allocation2 + $0xa]]  ;;  %s213_s10 = sld [smem:[#allocation2 + $0xb]] }
  0x23   :  { %s358_s11 = sld [smem:[#allocation2 + $0x7]]  ;;  %s360_s12 = sld [smem:[#allocation2 + $0x2]] }
  0x24   :  { %s362_s13 = sld [smem:[#allocation2 + $0x5]]  ;;  %s364_s14 = sld [smem:[#allocation2 + $0x8]] }
  0x25   :  { %s366_s15 = sld [smem:[#allocation2 + $0x18]]  ;;  %v90_v3 = vstv %s348_s4  ;;  %v98_v4 = vstv %s350_s5  ;;  %s370_s16 = sld [smem:[#allocation2 + $0x19]] }
  0x26   :  { %v92_v7 = vstv %s352_s6  ;;  %v100_v8 = vstv %s354_s7  ;;  %s374_s17 = sld [smem:[#allocation2 + $0xc]]  ;;  %s376_s18 = sld [smem:[#allocation2 + $0xd]] }
  0x27   :  { %v84_v5 = vstv %s211_s9  ;;  %v95_v12 = vstv %s356_s8  ;;  %s379_s19 = sld [smem:[#allocation2 + $0xf]]  ;;  %s381_s20 = sld [smem:[#allocation2 + $0x12]] }
  0x28   :  { %v86_v6 = vstv %s212_s1  ;;  %v85_v9 = vsub.f32 %v67_v0, %v84_v5  ;;  %v88_v11 = vstv %s213_s10  ;;  %s384_s21 = sld [smem:[#allocation2 + $0x10]]  ;;  %s223_s22 = sld [smem:[#allocation2 + $0x15]]  ;;  %v81_v5 = vld [vmem:[#allocation6 + $0xe] sm:$0x3] }
  0x29   :  { %v87_v10 = vsub.f32 %v69_v1, %v86_v6  ;;  %v89_v13 = vsub.f32 %v71_v2, %v88_v11  ;;  %v106_v14 = vstv %s360_s12  ;;  %s386_s23 = sld [smem:[#allocation2 + $0x16]]  ;;  %s388_s24 = sld [smem:[#allocation2 + $0x17]]  ;;  %v103_v20 = vstv %s358_s11 }
  0x2a   :  { %v91_v15 = vmul.f32 %v90_v3, %v85_v9  ;;  %v99_v17 = vmul.f32 %v98_v4, %v85_v9  ;;  %v107_v21 = vmul.f32 %v106_v14, %v85_v9  ;;  %v108_v22 = vstv %s362_s13  ;;  %s392_s25 = sld [smem:[#allocation2 + $0xe]]  ;;  %s394_s26 = sld [smem:[#allocation2 + $0x11]]  ;;  %v73_v9 = vld [vmem:[#allocation6 + $0x6] sm:$0x3] }
  0x2b   :  { %v93_v16 = vmul.f32 %v92_v7, %v87_v10  ;;  %v101_v18 = vmul.f32 %v100_v8, %v87_v10  ;;  %v96_v19 = vmul.f32 %v95_v12, %v89_v13  ;;  %v109_v24 = vmul.f32 %v108_v22, %v87_v10  ;;  %s397_s27 = sld [smem:[#allocation2 + $0x13]]  ;;  %s400_s28 = sld [smem:[#allocation2 + $0x14]]  ;;  %v75_v10 = vld [vmem:[#allocation6 + $0x8] sm:$0x3]  ;;  %v83_v22 = vld [vmem:[#allocation6 + $0x10] sm:$0x3] }
  0x2c   :  { %v111_v25 = vstv %s364_s14  ;;  %v104_v28 = vmul.f32 %v103_v20, %v89_v13  ;;  %v116_v29 = vstv %s366_s15  ;;  %v137_v33 = vstv %s374_s17  ;;  %s403_s30 = sld [smem:[#allocation2 + $0x1c]]  ;;  %s411_s3 = sld [smem:[#allocation2 + $0x1a]] }
  0x2d   :  { %v94_v23 = vadd.f32 %v93_v16, %v91_v15  ;;  %v102_v27 = vadd.f32 %v101_v18, %v99_v17  ;;  %v110_v30 = vadd.f32 %v109_v24, %v107_v21  ;;  %v112_v31 = vmul.f32 %v111_v25, %v89_v13  ;;  %s413_s4 = sld [smem:[#allocation2 + $0x1b]]  ;;  %s231_s5 = sld [smem:[#allocation2 + $0x1d]] }
  0x2e   :  { %v131_v32 = vstv %s223_s22  ;;  %v139_v35 = vstv %s379_s19  ;;  %v142_v36 = vstv %s381_s20  ;;  %v145_v39 = vstv %s376_s18  ;;  %s305_s6 = smov [#allocation7]  }
  0x2f   :  { %v97_v26 = vadd.f32 %v96_v19, %v94_v23  ;;  %v132_v34 = vsub.f32 %v67_v0, %v131_v32  ;;  %v133_v37 = vstv %s386_s23  ;;  %v135_v38 = vstv %s388_s24  ;;  %s190_s7 = sshll.u32 %s305_s6, 4  ;;  %s191_s7 = int_to_ptr.vmem [resolvable:$true] %s190_s7 }
  0x30   :  { %v147_v40 = vstv %s384_s21  ;;  %v122_v41 = vstv %s370_s16  ;;  %v134_v42 = vsub.f32 %v69_v1, %v133_v37  ;;  %v136_v43 = vsub.f32 %v71_v2, %v135_v38  ;;  %s273_s8 = scalar_lea.vmem %s191_s7, 192  ;;  %p278_p12 = scmp.lt.s32.totalorder %s191_s7, %s191_s7 }
  0x31   :  { %237 = vrcp.f32 %v97_v26  ;;  %v138_v44 = vmul.f32 %v137_v33, %v132_v34  ;;  %v105_v45 = vadd.f32 %v104_v28, %v102_v27  ;;  %v113_v46 = vadd.f32 %v112_v31, %v110_v30  ;;  %v77_v26 = vld [vmem:[#allocation6 + $0xa] sm:$0x3]  ;;  %v79_v27 = vld [vmem:[#allocation6 + $0xc] sm:$0x3]  ;;  %p274_p11 = scmp.ne.s32.totalorder %s191_s7, %s273_s8  ;;  %p279_p13 = scmp.lt.s32.totalorder %s273_s8, %s273_s8 }
  0x32   :  { %v153_v47 = vstv %s392_s25  ;;  %v155_v48 = vstv %s394_s26  ;;  %v140_v49 = vmul.f32 %v139_v35, %v134_v42  ;;  %v143_v50 = vmul.f32 %v142_v36, %v136_v43 }
  0x33   :  { %v146_v51 = vmul.f32 %v145_v39, %v132_v34  ;;  %v148_v52 = vmul.f32 %v147_v40, %v134_v42  ;;  %v150_v53 = vstv %s397_s27  ;;  %v154_v54 = vmul.f32 %v153_v47, %v132_v34  ;;  %p280_p0 = por %p279_p13, %p278_p12 }
  0x34   :  { %v156_v55 = vmul.f32 %v155_v48, %v134_v42  ;;  %v141_v56 = vadd.f32 %v140_v49, %v138_v44  ;;  %v158_v57 = vstv %s400_s28  ;;  %v117_v58 = vmul.f32 %v116_v29, %v105_v45 }
  0x35   :  { %v123_v59 = vmul.f32 %v122_v41, %v113_v46  ;;  %v128_v60 = vstv %s403_s30  ;;  %v149_v62 = vadd.f32 %v148_v52, %v146_v51  ;;  %v151_v63 = vmul.f32 %v150_v53, %v136_v43  ;;  %p281_p1 = pnand %p280_p0, %p274_p11 }
  0x36   :  { %v144_v61 = vadd.f32 %v143_v50, %v141_v56  ;;  %v157_v0 = vadd.f32 %v156_v55, %v154_v54  ;;  %v159_v1 = vmul.f32 %v158_v57, %v136_v43  ;;  %v119_v3 = vstv %s411_s3 }
  0x37   :  { %v125_v4 = vstv %s413_s4  ;;  %v152_v11 = vadd.f32 %v151_v63, %v149_v62  ;;  %v171_v20 = vstv %s231_s5 }
  0x38   :  { %239 = vrcp.f32 %v144_v61  ;;  %v160_v15 = vadd.f32 %v159_v1, %v157_v0 }
  0x39   :  { %v163_v18 = vmul.f32 %v152_v11, %v116_v29 }
  0x3a   :  { %v167_v19 = vmul.f32 %v160_v15, %v122_v41 }
  0x3b   :  { %v238_v2 = vpop.eup %237 }
  0x3c   :  { %v118_v6 = vmul.f32 %v238_v2, %v117_v58  ;;  %v124_v7 = vmul.f32 %v238_v2, %v123_v59  ;;  %v129_v8 = vmul.f32 %v238_v2, %v128_v60 }
  0x3e   :  { %v120_v12 = vadd.f32 %v119_v3, %v118_v6  ;;  %v126_v13 = vadd.f32 %v125_v4, %v124_v7  ;;  %v130_v14 = vsub.f32 %v129_v8, %v81_v5 }
  0x40   :  { %v121_v16 = vsub.f32 %v120_v12, %v73_v9  ;;  %v127_v17 = vsub.f32 %v126_v13, %v75_v10  ;;  %178 = vst [vmem:[#allocation7 + $0x4] sm:$0x3] %v130_v14 }
  0x42   :  { %174 = vst [vmem:[#allocation7] sm:$0x3] %v121_v16  ;;  %176 = vst [vmem:[#allocation7 + $0x2] sm:$0x3] %v127_v17  ;;  %v240_v21 = vpop.eup %239 }
  0x43   :  { %v164_v23 = vmul.f32 %v240_v21, %v163_v18  ;;  %v168_v24 = vmul.f32 %v240_v21, %v167_v19  ;;  %v172_v25 = vmul.f32 %v240_v21, %v171_v20 }
  0x45   :  { %v165_v28 = vadd.f32 %v164_v23, %v119_v3  ;;  %v169_v30 = vadd.f32 %v168_v24, %v125_v4  ;;  %v173_v31 = vsub.f32 %v172_v25, %v83_v22 }
  0x47   :  { %v166_v32 = vsub.f32 %v165_v28, %v77_v26  ;;  %v170_v33 = vsub.f32 %v169_v30, %v79_v27  ;;  %184 = vst [vmem:[#allocation7 + $0xa] sm:$0x3] %v173_v31 }
  0x49   :  { %180 = vst [vmem:[#allocation7 + $0x6] sm:$0x3] %v166_v32  ;;  %182 = vst [vmem:[#allocation7 + $0x8] sm:$0x3] %v170_v33 }
  0x4a   :  { %284 = shalt.err (!%p281_p1)
}
  0x4b   :  { %s285_s10 = scalar_lea.hbm %s444_s2, 192 }
  0x4c   :  { %p286_p2 = scmp.ne.s32.totalorder %s444_s2, %s285_s10  ;;  %p289_p3 = scmp.lt.u32.totalorder %s285_s10, %s444_s2 }
  0x4e   :  { %p291_p4 = pnand %p289_p3, %p286_p2 }
  0x50   :  { %294 = shalt.err (!%p291_p4)
}
  0x51   :  { %196 = dma.vmem_to_hbm [thread:$0]  %s191_s7, 192, %s444_s2, [#allocation4], %s303_s0, %s303_s0, %s304_s29  }
  0x52   :  { %299 = dma.done.wait [#allocation4], 192  }
  0x53   :  { %300 = vsyncadd [#allocation4], 4294967104 }
  0x54   :  { %200 = vsyncpa [#allocation3], 1 }
  0x55   :  { %201 = vsyncpa [#allocation4], 1 }
  0x56   :  { %202 = vsyncpa [#allocation5], 1 }

</bundles_post_ra>
